<compile_context>
chip_gen: v7x
topology: tpu7x:2x2x1
jax: 0.10.0
libtpu: 0.0.40
codegen_flags: <defaults>
</compile_context>

<pallas_src>
import math

import jax
import jax.numpy as jnp
from jax.experimental import pallas as pl
from jax.experimental.pallas import tpu as pltpu

_LANE = 128
_SUBLANE = 8
_HIDDEN_CHUNK = 512  # W1 output columns per inner step (MXU/EUP overlap)


def _round_up(x, m):
    return (x + m - 1) // m * m


def _make_nsp_kernel(d, hidden_chunk):
    n_chunks = -(-d // hidden_chunk)

    def nsp_kernel(x_ref, w1_ref, b1_ref, w2_ref, o_ref):
        # Cast activations to bf16 once; feeds both MXU passes at native rate,
        # with f32 accumulation via preferred_element_type.
        x_bf = x_ref[...].astype(jnp.bfloat16)
        acc = jnp.zeros(o_ref.shape, jnp.float32)
        # Static chunking over W1's output columns: tanh (EUP) + cast (VPU) of
        # chunk j can overlap the MXU matmul of chunk j+1 (different VLIW slots).
        for c in range(n_chunks):
            c0 = c * hidden_chunk
            c1 = min(d, c0 + hidden_chunk)
            h = jnp.tanh(
                jnp.dot(x_bf, w1_ref[:, c0:c1], preferred_element_type=jnp.float32)
                + b1_ref[:, c0:c1]
            )
            acc = acc + jnp.dot(
                h.astype(jnp.bfloat16),
                w2_ref[c0:c1, :],
                preferred_element_type=jnp.float32,
            )
        o_ref[...] = acc.astype(o_ref.dtype)

    return nsp_kernel


def prepare_params(w1, b1, w2):
    """One-time (model-load) preprocessing.

    Hoisted out of the per-call path so every forward does not re-pay the
    D*D HBM read+write for the weight cast.
      w1: [D, D] stored [in, out]; b1: [D]; w2: [D, n_out] stored [in, out].
    """
    D = w1.shape[0]
    n_out = w2.shape[1]
    assert w1.shape == (D, D)
    assert n_out <= _LANE, "lane-padded output head assumes n_out <= 128"
    w1b = w1.astype(jnp.bfloat16)
    b1r = b1.reshape(1, D).astype(jnp.float32)
    # Lane-dense output head: pad W2 to 128 output columns (full-width vst).
    w2p = jnp.zeros((D, _LANE), jnp.bfloat16).at[:, :n_out].set(
        w2.astype(jnp.bfloat16)
    )
    return w1b, b1r, w2p


def nsp_forward(x, w1b, b1r, w2p, b2, *, tb=2048):
    """x: [B, D]; (w1b, b1r, w2p) from prepare_params(); b2: [n_out]."""
    B, D = x.shape
    assert w1b.shape == (D, D)
    assert w2p.shape == (D, _LANE)
    n_out = b2.shape[-1]
    out_dtype = x.dtype

    # --- batch tile --------------------------------------------------------
    b8 = _round_up(B, _SUBLANE)
    TB = min(_round_up(tb, _SUBLANE), b8)
    # v7x has 2 TensorCores: give the "parallel" batch axis >= 2 steps whenever
    # possible (harmless on single-TC v5e/v6e).
    if b8 >= 2 * _SUBLANE:
        TB = min(TB, _round_up(-(-B // 2), _SUBLANE))

    # --- generation-aware VMEM budget --------------------------------------
    try:
        vmem_cap = int(pltpu.get_tpu_info().vmem_capacity_bytes)
    except Exception:
        vmem_cap = 64 * 1024 * 1024  # conservative: assume v7x (64 MiB)
    budget = int(vmem_cap * 0.75)    # headroom for compiler scratch

    def vmem_est(tb_):
        return (
            2 * tb_ * D * x.dtype.itemsize  # x tile (double-buffered)
            + tb_ * D * 2                   # in-kernel bf16 copy of x
            + 2 * D * D * 2                 # W1 bf16 (assume double-buffered)
            + 2 * D * 4                     # b1 (f32)
            + 2 * D * _LANE * 2             # padded W2 (bf16)
            + 2 * tb_ * _LANE * 2           # out tile bf16 (double-buffered)
            + tb_ * _LANE * 4               # f32 logits accumulator
        )

    while TB > _SUBLANE and vmem_est(TB) > budget:
        TB = max(_SUBLANE, _round_up(TB // 2, _SUBLANE))
    # TODO(synk): for very large D where resident bf16 W1 (~2*D*D bytes) no
    # longer fits v7x's 64 MiB VMEM, add an "arbitrary" N-tiling grid axis over
    # W1 columns with a VMEM hidden-state accumulator instead of full residency.

    grid = (pl.cdiv(B, TB),)  # ragged tail -> masked partial last block

    vmem_limit = min(
        budget, max(32 * 1024 * 1024, int(vmem_est(TB) * 1.5) + (2 << 20))
    )

    out = pl.pallas_call(
        _make_nsp_kernel(D, min(D, _HIDDEN_CHUNK)),
        out_shape=jax.ShapeDtypeStruct((B, _LANE), jnp.bfloat16),
        grid=grid,
        in_specs=[
            pl.BlockSpec((TB, D), lambda i: (i, 0)),      # x: walks the batch
            pl.BlockSpec((D, D), lambda i: (0, 0)),       # W1 (bf16): resident
            pl.BlockSpec((1, D), lambda i: (0, 0)),       # b1: resident
            pl.BlockSpec((D, _LANE), lambda i: (0, 0)),   # W2 padded (bf16): resident
        ],
        out_specs=pl.BlockSpec((TB, _LANE), lambda i: (i, 0)),
        compiler_params=pltpu.CompilerParams(
            dimension_semantics=("parallel",),
            vmem_limit_bytes=vmem_limit,
        ),
    )(x, w1b, b1r, w2p)

    # Drop the 126 zero lanes of the padded head; add the tiny output bias here.
    logits = out[:, :n_out].astype(jnp.float32) + b2.astype(jnp.float32)[None, :]
    return logits.astype(out_dtype)


def init_params(key, dim):
    # Deterministic init mimicking PyTorch Linear default: U(-1/sqrt(in), 1/sqrt(in)).
    k1, k2, k3, k4 = jax.random.split(key, 4)
    bound = 1.0 / math.sqrt(dim)
    w1 = jax.random.uniform(k1, (dim, dim), jnp.float32, -bound, bound)  # [in, out]
    b1 = jax.random.uniform(k2, (dim,), jnp.float32, -bound, bound)
    w2 = jax.random.uniform(k3, (dim, 2), jnp.float32, -bound, bound)    # [in, out]
    b2 = jax.random.uniform(k4, (2,), jnp.float32, -bound, bound)
    return w1, b1, w2, b2


def _reference(x, w1, b1, w2, b2):
    # Matches the kernel's numerics: bf16 operands, f32 accumulation.
    xb = x.astype(jnp.bfloat16).astype(jnp.float32)
    w1b = w1.astype(jnp.bfloat16).astype(jnp.float32)
    h = jnp.tanh(jnp.dot(xb, w1b, precision=jax.lax.Precision.HIGHEST) + b1[None, :])
    hb = h.astype(jnp.bfloat16).astype(jnp.float32)
    w2b = w2.astype(jnp.bfloat16).astype(jnp.float32)
    return jnp.dot(hb, w2b, precision=jax.lax.Precision.HIGHEST) + b2[None, :]


if __name__ == "__main__":
    key = jax.random.PRNGKey(0)
    kx1, kp1, kx2, kp2 = jax.random.split(key, 4)

    # Case 1: ragged batch (B not a multiple of the tile), tiny tile -> 2-step
    # pipelined grid with a masked partial last block.
    B, D = 12, 128
    x = jax.random.normal(kx1, (B, D), jnp.float32)
    w1, b1, w2, b2 = init_params(kp1, D)
    w1b, b1r, w2p = prepare_params(w1, b1, w2)
    out = nsp_forward(x, w1b, b1r, w2p, b2, tb=8)
    jax.block_until_ready(out)
    assert out.shape == (B, 2)
    ref = _reference(x, w1, b1, w2, b2)
    assert jnp.allclose(out, ref, atol=2e-2, rtol=2e-2), float(
        jnp.max(jnp.abs(out - ref))
    )

    # Case 2: default (large) tile, multiple-of-8 batch -> dual-TC split path.
    B2, D2 = 16, 256
    x2 = jax.random.normal(kx2, (B2, D2), jnp.float32)
    w1, b1, w2, b2 = init_params(kp2, D2)
    w1b, b1r, w2p = prepare_params(w1, b1, w2)
    out2 = nsp_forward(x2, w1b, b1r, w2p, b2)
    jax.block_until_ready(out2)
    assert out2.shape == (B2, 2)
    ref2 = _reference(x2, w1, b1, w2, b2)
    assert jnp.allclose(out2, ref2, atol=2e-2, rtol=2e-2), float(
        jnp.max(jnp.abs(out2 - ref2))
    )

    print("KERNEL_OK")
</pallas_src>

<mosaic_0001>
module attributes {stable_mosaic.version = 11 : i64} {
  func.func @nsp_kernel(%arg0: i32, %arg1: memref<8x128xf32, #tpu.memory_space<vmem>>, %arg2: memref<128x128xbf16, #tpu.memory_space<vmem>>, %arg3: memref<1x128xf32, #tpu.memory_space<vmem>>, %arg4: memref<128x128xbf16, #tpu.memory_space<vmem>>, %arg5: memref<8x128xbf16, #tpu.memory_space<vmem>>) attributes {dimension_semantics = [#tpu.dimension_semantics<parallel>], iteration_bounds = array<i64: 2>, scalar_prefetch = 0 : i64, scratch_operands = 0 : i64, tpu.core_type = #tpu.core_type<tc>, window_params = [{transform_indices = @transform_0, window_bounds = array<i64: 8, 128>}, {pipeline_mode = #tpu.pipeline_mode<synchronous>, transform_indices = @transform_1, window_bounds = array<i64: 128, 128>}, {pipeline_mode = #tpu.pipeline_mode<synchronous>, transform_indices = @transform_2, window_bounds = array<i64: 1, 128>}, {pipeline_mode = #tpu.pipeline_mode<synchronous>, transform_indices = @transform_3, window_bounds = array<i64: 128, 128>}, {transform_indices = @transform_4, window_bounds = array<i64: 8, 128>}]} {
    %c0 = arith.constant 0 : index
    %c0_0 = arith.constant 0 : index
    %0 = vector.load %arg1[%c0, %c0_0] : memref<8x128xf32, #tpu.memory_space<vmem>>, vector<8x128xf32>
    %1 = arith.truncf %0 : vector<8x128xf32> to vector<8x128xbf16>
    %cst = arith.constant 0.000000e+00 : f32
    %2 = vector.broadcast %cst : f32 to vector<8x128xf32>
    %c0_1 = arith.constant 0 : index
    %c0_2 = arith.constant 0 : index
    %3 = vector.load %arg2[%c0_1, %c0_2] : memref<128x128xbf16, #tpu.memory_space<vmem>>, vector<128x128xbf16>
    %cst_3 = arith.constant dense<0.000000e+00> : vector<8x128xf32>
    %4 = tpu.matmul %1, %3, %cst_3 {dimension_numbers = #tpu.dot_dimension_numbers<[1], [0], [0], [1], [0, 0, 1, 1], [], []>} : vector<8x128xbf16>, vector<128x128xbf16>, vector<8x128xf32> -> vector<8x128xf32>
    %c0_4 = arith.constant 0 : index
    %c0_5 = arith.constant 0 : index
    %5 = vector.load %arg3[%c0_4, %c0_5] : memref<1x128xf32, #tpu.memory_space<vmem>>, vector<1x128xf32>
    %6 = vector.broadcast %5 : vector<1x128xf32> to vector<8x128xf32>
    %7 = arith.addf %4, %6 : vector<8x128xf32>
    %8 = math.tanh %7 : vector<8x128xf32>
    %9 = arith.truncf %8 : vector<8x128xf32> to vector<8x128xbf16>
    %c0_6 = arith.constant 0 : index
    %c0_7 = arith.constant 0 : index
    %10 = vector.load %arg4[%c0_6, %c0_7] : memref<128x128xbf16, #tpu.memory_space<vmem>>, vector<128x128xbf16>
    %cst_8 = arith.constant dense<0.000000e+00> : vector<8x128xf32>
    %11 = tpu.matmul %9, %10, %cst_8 {dimension_numbers = #tpu.dot_dimension_numbers<[1], [0], [0], [1], [0, 0, 1, 1], [], []>} : vector<8x128xbf16>, vector<128x128xbf16>, vector<8x128xf32> -> vector<8x128xf32>
    %12 = arith.addf %2, %11 : vector<8x128xf32>
    %13 = arith.truncf %12 : vector<8x128xf32> to vector<8x128xbf16>
    %c0_9 = arith.constant 0 : index
    %c0_10 = arith.constant 0 : index
    %14 = vector.load %arg5[%c0_9, %c0_10] : memref<8x128xbf16, #tpu.memory_space<vmem>>, vector<8x128xbf16>
    tpu.vector_store %arg5[%c0_9, %c0_10], %13 {strides = array<i32>} : memref<8x128xbf16, #tpu.memory_space<vmem>>, vector<8x128xbf16>,
    return
  }
  func.func @transform_0(%arg0: i32) -> (i32, i32) {
    %c0_i32 = arith.constant 0 : i32
    %c0_i32_0 = arith.constant 0 : i32
    return %arg0, %c0_i32 : i32, i32
  }
  func.func @transform_1(%arg0: i32) -> (i32, i32) {
    %c0_i32 = arith.constant 0 : i32
    %c0_i32_0 = arith.constant 0 : i32
    %c0_i32_1 = arith.constant 0 : i32
    return %c0_i32, %c0_i32_0 : i32, i32
  }
  func.func @transform_2(%arg0: i32) -> (i32, i32) {
    %c0_i32 = arith.constant 0 : i32
    %c0_i32_0 = arith.constant 0 : i32
    %c0_i32_1 = arith.constant 0 : i32
    return %c0_i32, %c0_i32_0 : i32, i32
  }
  func.func @transform_3(%arg0: i32) -> (i32, i32) {
    %c0_i32 = arith.constant 0 : i32
    %c0_i32_0 = arith.constant 0 : i32
    %c0_i32_1 = arith.constant 0 : i32
    return %c0_i32, %c0_i32_0 : i32, i32
  }
  func.func @transform_4(%arg0: i32) -> (i32, i32) {
    %c0_i32 = arith.constant 0 : i32
    %c0_i32_0 = arith.constant 0 : i32
    return %arg0, %c0_i32 : i32, i32
  }
}

</mosaic_0001>

<bundles_post_ra>
// kernel: tpu_custom_call.1
= control target key start
LH: loop header
LB: loop body
LE: loop exit
PB: predicated region body
PF: predicated region fallthrough
CT: control target
= control target key end

     0   :  { %9 = vsyncpa [#allocation3], 0  ;;  %s1174_s0 = inlined_call_operand.hbm [shape: f32[12,128], index: 0, kind: input, shape index: {}]   ;;  %s1175_s1 = inlined_call_operand.hbm [shape: bf16[128,128], index: 1, kind: input, shape index: {}]   ;;  %s1176_s2 = inlined_call_operand.vmem [shape: f32[1,128], index: 2, kind: input, shape index: {}]   ;;  %s1177_s3 = inlined_call_operand.hbm [shape: bf16[128,128], index: 3, kind: input, shape index: {}]   ;;  %s1178_s4 = inlined_call_operand.hbm [shape: bf16[12,128], index: 4, kind: output, shape index: {}]  }
   0x1   :  { %11 = vsyncpa [#allocation3 + $0x1], 0 }
   0x2   :  { %12 = vsyncpa [#allocation6], 0 }
   0x3   :  { %13 = vsyncpa [#allocation4], 0 }
   0x4   :  { %15 = vsyncpa [#allocation4 + $0x1], 0  ;;  %s938_s15 = smov 0   ;;  %s940_s16 = smov 0  }
   0x5   :  { %s942_s17 = smov 0   ;;  %s944_s18 = smov 0  }
   0x6 LB: > { %s959_s19 = sadd.s32 4294967295, %s903_s18   ;;  %s567_s20 = sadd.s32 4294967294, %s903_s18   ;;  %s903_s18 = sphi %s944_s18, %s1198_s18   ;;  %s899_s17 = sphi %s942_s17, %s1197_s17   ;;  %s895_s16 = sphi %s940_s16, %s1196_s16   ;;  %s891_s15 = sphi %s938_s15, %s1195_s15  }
   0x7   : > { %p41_p0 = scmp.ne.s32.totalorder %s895_s16, %s891_s15  ;;  %p1179_p1 = scmp.eq.s32.totalorder %s959_s19, 0 }
   0x8   : > { %p134_p3 = scmp.eq.s32.totalorder %s567_s20, 1  ;;  %p568_p5 = scmp.ge.s32.totalorder %s903_s18, 1 }
   0x9   : > { %p968_p4 = por %p1179_p1, %p41_p0  ;;  %p141_p7 = scmp.lt.s32.totalorder %s903_s18, 3 }
   0xa   : > { %p973_p6 = por %p134_p3, %p41_p0  ;;  %s905_s24 = smov [#allocation5]  }
   0xb   : > { %s1182_s21 = scalar_select %p968_p4, 1, 0 }
   0xc   : > { %s1183_s22 = scalar_select %p973_p6, 1, 0 }
   0xd   : > { %p978_p8 = pnand %p568_p5, %p141_p7  ;;  %s153_s25 = sshll.u32 %s905_s24, 4  ;;  %s982_s25 = int_to_ptr.vmem [resolvable:$true] %s153_s25 }
   0xe   : > { %s906_s27 = smov [#allocation7]   ;;  %s747_s5 = scalar_lea.hbm %s1175_s1, 1024 }
   0xf   : > { %p670_p9 = pneg %p978_p8  ;;  %s169_s28 = sshll.u32 %s906_s27, 4  ;;  %s993_s28 = int_to_ptr.vmem [resolvable:$true] %s169_s28 }
  0x10   : > { %p748_p12 = scmp.ne.s32.totalorder %s1175_s1, %s747_s5  ;;  %p754_p5 = scmp.lt.u32.totalorder %s747_s5, %s1175_s1 }
  0x11   : > { %p989_p11 = pnand %p670_p9, %p1179_p1 }
  0x13   : > { %p749_p13 = pneg %p989_p11 }
  0x15   : > { %p750_p0 = pnand %p749_p13, %p748_p12 }
  0x17   : > { %p751_p3 = pneg %p750_p0 }
  0x19   : > { %p756_p7 = pnand %p754_p5, %p751_p3 }
  0x1b   : > { %759 = shalt.err (!%p756_p7)
}
  0x1c   : > { %s760_s10 = scalar_lea.vmem %s982_s25, 1024  ;;  %p768_p2 = scmp.lt.s32.totalorder %s982_s25, %s982_s25 }
  0x1d   : > { %p761_p9 = scmp.ne.s32.totalorder %s982_s25, %s760_s10  ;;  %p769_p12 = scmp.lt.s32.totalorder %s760_s10, %s760_s10 }
  0x1f   : > { %p763_p10 = pnand %p761_p9, %p749_p13  ;;  %p770_p0 = por %p769_p12, %p768_p2 }
  0x21   : > { %p764_p1 = pneg %p763_p10 }
  0x23   : > { %p771_p6 = pnand %p770_p0, %p764_p1 }
  0x25   : > { %774 = shalt.err (!%p771_p6)
}
  0x26   : > { %s907_s11 = smov 64   ;;  %s908_s12 = smov 4  }
  0x27   : > { %673 = dma.hbm_to_vmem [thread:$0]  (!%p989_p11), %s1175_s1, 1024, %s982_s25, [#allocation6], %s907_s11, %s907_s11, %s908_s12  }
  0x28   : > { %s775_s27 = scalar_lea.hbm %s1177_s3, 1024 }
  0x29   : > { %p776_p2 = scmp.ne.s32.totalorder %s1177_s3, %s775_s27  ;;  %p782_p10 = scmp.lt.u32.totalorder %s775_s27, %s1177_s3 }
  0x2b   : > { %p778_p1 = pnand %p776_p2, %p749_p13 }
  0x2d   : > { %p779_p6 = pneg %p778_p1 }
  0x2f   : > { %p784_p3 = pnand %p782_p10, %p779_p6 }
  0x31   : > { %787 = shalt.err (!%p784_p3)
}
  0x32   : > { %s788_s25 = scalar_lea.vmem %s993_s28, 1024  ;;  %p796_p12 = scmp.lt.s32.totalorder %s993_s28, %s993_s28 }
  0x33   : > { %p789_p5 = scmp.ne.s32.totalorder %s993_s28, %s788_s25  ;;  %p797_p0 = scmp.lt.s32.totalorder %s788_s25, %s788_s25 }
  0x35   : > { %p791_p7 = pnand %p789_p5, %p749_p13  ;;  %p798_p2 = por %p797_p0, %p796_p12 }
  0x37   : > { %p792_p9 = pneg %p791_p7 }
  0x39   : > { %p799_p1 = pnand %p798_p2, %p792_p9 }
  0x3b   : > { %802 = shalt.err (!%p799_p1)
}
  0x3c   : > { %676 = dma.hbm_to_vmem [thread:$0]  (!%p989_p11), %s1177_s3, 1024, %s993_s28, [#allocation6], %s907_s11, %s907_s11, %s908_s12  }
  0x3d   : > { %s1048_s9 = sadd.s32 1, %s903_s18   ;;  %s28_s26 = sadd.s32 1, %s899_s17 }
  0x3e   : > { %s25_s10 = ssub.s32 %s903_s18, %s1048_s9  ;;  %p35_p13 = scmp.ne.s32.totalorder %s899_s17, %s895_s16 }
  0x3f   : > { %p26_p6 = scmp.eq.s32.totalorder %s25_s10, 0  ;;  %p36_p10 = scmp.eq.s32.totalorder %s903_s18, 0 }
  0x40   : > { %p1186_p3 = scmp.eq.s32.totalorder %s959_s19, 1  ;;  %p687_p7 = scmp.lt.s32.totalorder %s903_s18, 2 }
  0x41   : > { %s1064_s14 = scalar_select %p26_p6, %s899_s17, %s28_s26  }
  0x42   : > { %p1058_p5 = por %p1186_p3, %p35_p13  ;;  %p37_p9 = por %p36_p10, %p35_p13 }
  0x43   : > { %s183_s20 = sand.u32 1, %s899_s17   ;;  %s573_s28 = sshll.u32 %s903_s18, 7 }
  0x44   : > { %s1187_s13 = scalar_select %p1058_p5, 1, 0 }
  0x45   : > { %s572_s24 = sshll.u32 %s183_s20, 3  ;;  %s1071_s27 = scalar_lea.hbm %s1174_s0, %s573_s28 }
  0x46   : > { %s187_s29 = scalar_lea.vmem [#allocation2], %s572_s24  ;;  %p1075_p11 = pnand %p687_p7, %p37_p9 }
  0x47   : > { %s194_s30 = sshll.u32 %s187_s29, 4  ;;  %s184_s6 = scalar_lea.sflag [#allocation3], %s183_s20  ;;  %s1073_s30 = int_to_ptr.vmem [resolvable:$true] %s194_s30 }
  0x48   : > { %s803_s25 = scalar_lea.hbm %s1071_s27, 128  ;;  %p805_p0 = pneg %p1075_p11 }
  0x49   : > { %p804_p12 = scmp.ne.s32.totalorder %s1071_s27, %s803_s25  ;;  %s808_s26 = scalar_lea.hbm %s1174_s0, 256 }
  0x4a   : > { %p809_p13 = scmp.lt.u32.totalorder %s1071_s27, %s1174_s0  ;;  %p810_p6 = scmp.lt.u32.totalorder %s808_s26, %s803_s25 }
  0x4b   : > { %p806_p2 = pnand %p805_p0, %p804_p12  ;;  %p812_p3 = scmp.lt.u32.totalorder %s803_s25, %s1071_s27 }
  0x4c   : > { %p811_p10 = por %p810_p6, %p809_p13 }
  0x4d   : > { %p807_p1 = pneg %p806_p2 }
  0x4e   : > { %p813_p7 = por %p812_p3, %p811_p10 }
  0x50   : > { %p814_p9 = pnand %p813_p7, %p807_p1 }
  0x52   : > { %817 = shalt.err (!%p814_p9)
}
  0x53   : > { %s818_s20 = scalar_lea.vmem %s1073_s30, 128  ;;  %s909_s28 = smov [#allocation2]  }
  0x54   : > { %p819_p12 = scmp.ne.s32.totalorder %s1073_s30, %s818_s20  ;;  %s823_s11 = sshll.u32 %s909_s28, 4  ;;  %s824_s11 = int_to_ptr.vmem [resolvable:$false] %s823_s11 }
  0x55   : > { %s825_s12 = scalar_lea.vmem %s824_s11, 256  ;;  %p826_p4 = scmp.lt.s32.totalorder %s1073_s30, %s824_s11 }
  0x56   : > { %p821_p2 = pnand %p819_p12, %p805_p0  ;;  %p827_p13 = scmp.lt.s32.totalorder %s825_s12, %s818_s20 }
  0x58   : > { %p822_p5 = pneg %p821_p2  ;;  %p828_p6 = por %p827_p13, %p826_p4 }
  0x5a   : > { %p829_p10 = pnand %p828_p6, %p822_p5 }
  0x5c   : > { %832 = shalt.err (!%p829_p10)
}
  0x5d   : > { %680 = dma.hbm_to_vmem [thread:$0]  (!%p1075_p11), %s1071_s27, 128, %s1073_s30, %s184_s6  }
  0x5e   : > { %203 = sbr.rel (%p978_p8) target bundleno = 594 (0x252), region = 36  ;;  %s1107_s29 = sand.u32 (!%p978_p8), 1, %s895_s16  }
  0x5f   : > { %s575_s25 = sshll.u32 (!%p978_p8), %s1107_s29, 3  ;;  %s206_s7 = scalar_lea.sflag (!%p978_p8), [#allocation3], %s1107_s29 }
  0x60   : > { %s1111_s8 = scalar_lea.vmem (!%p978_p8), [#allocation2], %s575_s25  ;;  %p1189_p4 = scmp.ne.s32.totalorder (!%p978_p8), %s1182_s21, 0 }
  0x65   : > { %878 = dma.done.wait (%p1189_p4), %s206_s7, 128  }
  0x66   : > { %880 = vsyncadd (%p1189_p4), %s206_s7, 4294967168  ;;  %p1190_p5 = scmp.eq.s32.totalorder %s959_s19, 0 }
  0x68   : > { %882 = dma.done.wait (%p1190_p5), [#allocation6], 2048   ;;  %p1191_p8 = pmov %p1190_p5 }
  0x69   : > { %v910_v0 = vmov 0.0   ;;  %vm911_vm0 = vmmov 0   ;;  %v729_v1 = vld [vmem:[#allocation5] sm:$0xff]   ;;  %v730_v2 = vld [vmem:[#allocation5 + $0x8] sm:$0xff]   ;;  %v731_v3 = vld [vmem:[#allocation5 + $0x10] sm:$0xff]   ;;  %s578_s27 = sshll.u32 %s1107_s29, 2 }
  0x6a   : > { %884 = vsyncadd (%p1191_p8), [#allocation6], 4294965248  ;;  %618 = vmatprep.subr.bf16.mxu0 %v910_v0  ;;  %634 = vmatprep.mubr.msk.bf16.mxu0 %vm911_vm0, %v910_v0  ;;  %v737_v4 = vld [vmem:[#allocation7] sm:$0xff]   ;;  %v732_v5 = vld [vmem:[#allocation5 + $0x18] sm:$0xff]   ;;  %s597_s30 = sshll.u32 %s959_s19, 6  ;;  %s241_s5 = scalar_lea.vmem [#allocation8], %s578_s27 }
  0x6b   : > { %638 = vmatprep.subr.bf16.mxu1 %v910_v0  ;;  %654 = vmatprep.mubr.msk.bf16.mxu1 %vm911_vm0, %v910_v0  ;;  %v738_v6 = vld [vmem:[#allocation7 + $0x8] sm:$0xff]   ;;  %v733_v7 = vld [vmem:[#allocation5 + $0x20] sm:$0xff]   ;;  %v739_v8 = vld [vmem:[#allocation7 + $0x10] sm:$0xff]   ;;  %s478_s6 = sshll.u32 %s241_s5, 4  ;;  %s1130_s24 = scalar_lea.hbm %s1178_s4, %s597_s30  ;;  %s1132_s6 = int_to_ptr.vmem [resolvable:$true] %s478_s6 }
  0x6c   : > { %619 = vmatpush3.bf16.msra.mxu0 %v729_v1  ;;  %639 = vmatpush3.bf16.msra.mxu1 %v737_v4  ;;  %v734_v9 = vld [vmem:[#allocation5 + $0x28] sm:$0xff]   ;;  %v740_v10 = vld [vmem:[#allocation7 + $0x18] sm:$0xff]   ;;  %v735_v11 = vld [vmem:[#allocation5 + $0x30] sm:$0xff]   ;;  %s465_s20 = scalar_lea.sflag [#allocation4], %s1107_s29  ;;  %s833_s19 = scalar_lea.vmem %s1132_s6, 64 }
  0x6d   : > { %620 = vmatprep.subr.bf16.mxu0 %v910_v0  ;;  %640 = vmatprep.subr.bf16.mxu1 %v910_v0  ;;  %v736_v12 = vld [vmem:[#allocation5 + $0x38] sm:$0xff]   ;;  %v741_v15 = vld [vmem:[#allocation7 + $0x20] sm:$0xff]   ;;  %v742_v16 = vld [vmem:[#allocation7 + $0x28] sm:$0xff]   ;;  %p834_p11 = scmp.ne.s32.totalorder %s1132_s6, %s833_s19  ;;  %p1192_p0 = scmp.ne.s32.totalorder %s1187_s13, 0 }
  0x6e   : > { %v243_v13 = vld [vmem:[%s1111_s8] sm:$0xff]  ;;  %s912_s28 = smov [#allocation8]  }
  0x6f   : > { %v244_v14 = vpack.c.bf16 %v243_v13, %v243_v13  ;;  %v743_v17 = vld [vmem:[#allocation7 + $0x30] sm:$0xff]   ;;  %v744_v18 = vld [vmem:[#allocation7 + $0x38] sm:$0xff]   ;;  %p835_p1 = pnand %p834_p11, %p1192_p0  ;;  %s837_s11 = sshll.u32 %s912_s28, 4  ;;  %s838_s11 = int_to_ptr.vmem [resolvable:$false] %s837_s11 }
  0x70   : > { %621 = vmatpush3.bf16.msra.mxu0 %v730_v2  ;;  %641 = vmatpush3.bf16.msra.mxu1 %v738_v6  ;;  %v579_v19 = vld [vmem:[%s1176_s2] ss:$0 sm:$0xff]  ;;  %s839_s12 = scalar_lea.vmem %s838_s11, 128  ;;  %p840_p7 = scmp.lt.s32.totalorder %s1132_s6, %s838_s11 }
  0x71   : > { %622 = vmatprep.subr.bf16.mxu0 %v910_v0  ;;  %642 = vmatprep.subr.bf16.mxu1 %v910_v0  ;;  %p836_p3 = pneg %p835_p1  ;;  %p841_p9 = scmp.lt.s32.totalorder %s839_s12, %s833_s19 }
  0x73   : > { %p842_p12 = por %p841_p9, %p840_p7 }
  0x74   : > { %623 = vmatpush3.bf16.msra.mxu0 %v731_v3  ;;  %643 = vmatpush3.bf16.msra.mxu1 %v739_v8 }
  0x75   : > { %624 = vmatprep.subr.bf16.mxu0 %v910_v0  ;;  %644 = vmatprep.subr.bf16.mxu1 %v910_v0  ;;  %p843_p2 = pnand %p842_p12, %p836_p3 }
  0x78   : > { %625 = vmatpush3.bf16.msra.mxu0 %v732_v5  ;;  %645 = vmatpush3.bf16.msra.mxu1 %v740_v10 }
  0x79   : > { %626 = vmatprep.subr.bf16.mxu0 %v910_v0  ;;  %646 = vmatprep.subr.bf16.mxu1 %v910_v0 }
  0x7c   : > { %627 = vmatpush3.bf16.msra.mxu0 %v733_v7  ;;  %647 = vmatpush3.bf16.msra.mxu1 %v741_v15 }
  0x7d   : > { %628 = vmatprep.subr.bf16.mxu0 %v910_v0  ;;  %648 = vmatprep.subr.bf16.mxu1 %v910_v0 }
  0x80   : > { %629 = vmatpush3.bf16.msra.mxu0 %v734_v9  ;;  %649 = vmatpush3.bf16.msra.mxu1 %v742_v16 }
  0x81   : > { %630 = vmatprep.subr.bf16.mxu0 %v910_v0  ;;  %650 = vmatprep.subr.bf16.mxu1 %v910_v0 }
  0x84   : > { %631 = vmatpush3.bf16.msra.mxu0 %v735_v11  ;;  %651 = vmatpush3.bf16.msra.mxu1 %v743_v17 }
  0x85   : > { %632 = vmatprep.subr.bf16.mxu0 %v910_v0  ;;  %652 = vmatprep.subr.bf16.mxu1 %v910_v0 }
  0x88   : > { %633 = vmatpush3.bf16.msra.mxu0 %v736_v12  ;;  %653 = vmatpush3.bf16.msra.mxu1 %v744_v18 }
  0x8b   : > { %635 = vmatmul.mubr.bf16.vlgmr.msra.gmra.mrb[0].mxu0 %v244_v14 }
 0x15e   : > { %v350_v20 = vpop.f32.mrb[0].mxu0 }
 0x15f   : > { %v351_v21 = vadd.f32 %v579_v19, %v350_v20  ;;  %v636_v22 = vpop.f32.mrb[1].mxu0 }
 0x160   : > { %v353_v23 = vpop.f32.mrb[2].mxu0 }
 0x161   : > { %745 = vtanh.f32 %v351_v21  ;;  %v637_v24 = vpop.f32.mrb[3].mxu0 }
 0x16b   : > { %v746_v25 = vpop.eup %745 }
 0x16c   : > { %v357_v26 = vpack.c.bf16 %v746_v25, %v746_v25 }
 0x16e   : > { %655 = vmatmul.mubr.bf16.vlgmr.msra.gmra.mrb[0].mxu1 %v357_v26 }
 0x241   : > { %v456_v27 = vpop.f32.mrb[0].mxu1 }
 0x242   : > { %v462_v28 = vpack.c.bf16 %v456_v27, %v456_v27  ;;  %v656_v29 = vpop.f32.mrb[1].mxu1 }
 0x243   : > { %v459_v30 = vpop.f32.mrb[2].mxu1 }
 0x244   : > { %463 = vst [vmem:[%s241_s5] sm:$0xf] %v462_v28  ;;  %v657_v31 = vpop.f32.mrb[3].mxu1 }
 0x245   : > { %846 = shalt.err (!%p843_p2)
}
 0x246   : > { %s847_s29 = scalar_lea.hbm %s1130_s24, 64  ;;  %s851_s8 = scalar_lea.hbm %s1178_s4, 128 }
 0x247   : > { %p848_p13 = scmp.ne.s32.totalorder %s1130_s24, %s847_s29  ;;  %p852_p4 = scmp.lt.u32.totalorder %s1130_s24, %s1178_s4 }
 0x248   : > { %p853_p5 = scmp.lt.u32.totalorder %s851_s8, %s847_s29  ;;  %p855_p11 = scmp.lt.u32.totalorder %s847_s29, %s1130_s24 }
 0x249   : > { %p849_p6 = pnand %p848_p13, %p1192_p0 }
 0x24a   : > { %p854_p8 = por %p853_p5, %p852_p4 }
 0x24b   : > { %p850_p10 = pneg %p849_p6 }
 0x24c   : > { %p856_p1 = por %p855_p11, %p854_p8 }
 0x24e   : > { %p857_p3 = pnand %p856_p1, %p850_p10 }
 0x250   : > { %860 = shalt.err (!%p857_p3)
}
 0x251   : > { %668 = dma.vmem_to_hbm [thread:$0]  (%p1192_p0), %s1132_s6, 64, %s1130_s24, %s465_s20  }
 0x252 PF: > { %s490_s27 = sand.u32 1, %s891_s15   ;;  %p1193_p7 = scmp.ne.s32.totalorder %s1183_s22, 0 }
 0x253   : > { %p1194_p9 = scmp.ge.s32.totalorder %s903_s18, 2  ;;  %s491_s30 = scalar_lea.sflag [#allocation4], %s490_s27 }
 0x255   : > { %p682_p12 = pnand %p1194_p9, %p1193_p7 }
 0x257   : > { %886 = dma.done.wait (!%p682_p12), %s491_s30, 64  }
 0x258   : > { %888 = vsyncadd (!%p682_p12), %s491_s30, 4294967232  ;;  %p18_p2 = scmp.ge.s32.totalorder %s1048_s9, 4   ;;  %s1195_s15 = smov %s895_s16 }
 0x259   : > { %s1196_s16 = smov %s899_s17  ;;  %s1197_s17 = smov %s1064_s14 }
 0x25a   : > { %s1198_s18 = smov %s1048_s9  ;;  %20 = sbr.rel (!%p18_p2) target bundleno = 6 (0x6), region = 89 }
 0x261   :  { %496 = vsyncpa [#allocation3], 1 }
 0x262   :  { %498 = vsyncpa [#allocation3 + $0x1], 1 }
 0x263   :  { %499 = vsyncpa [#allocation6], 1 }
 0x264   :  { %500 = vsyncpa [#allocation4], 1 }
 0x265   :  { %502 = vsyncpa [#allocation4 + $0x1], 1 }

</bundles_post_ra>
